<compile_context>
chip_gen: v7x
topology: tpu7x:2x2x1
jax: 0.10.0
libtpu: 0.0.40
codegen_flags: <defaults>
</compile_context>

<pallas_src>
import functools

import jax
import jax.numpy as jnp
from jax import lax
from jax.experimental import pallas as pl
from jax.experimental.pallas import tpu as pltpu

_LANES = 128
_SUBLANES = 8
_MAX_CHUNK_ROWS = 64                 # 8 (8,128) groups per inner-loop step
_TARGET_BLOCK_BYTES = 4 * 1024 * 1024  # ~4 MiB per input block


def _cdiv(a, b):
    return -(-a // b)


def _round_up(a, b):
    return _cdiv(a, b) * b


def _psnr_sse_kernel(u_ref, g_ref, sse_ref, *, magnitude_psnr, rows_tile,
                     chunk_rows, kt, kt_per_core, valid_rows_last):
    """Accumulate per-batch partial sums of squared differences.

    u_ref, g_ref: (1, rows_tile, 128) blocks of the (B, rows, 128) inputs.
    sse_ref:      (1, 1, 8, 128) resident accumulator (per (core, batch)).
    """
    c = pl.program_id(0)          # reduction-split (core) axis
    k = pl.program_id(2)          # reduction axis (innermost)

    @pl.when(k == 0)
    def _():
        sse_ref[...] = jnp.zeros_like(sse_ref)

    n_chunks = rows_tile // chunk_rows
    groups_per_chunk = chunk_rows // _SUBLANES

    def accumulate(valid_rows):
        # valid_rows: None (all rows valid) or static int (mask rows >= it).
        def body(ci, acc):
            r0 = pl.multiple_of(ci * chunk_rows, chunk_rows)
            uc = u_ref[0, pl.ds(r0, chunk_rows), :]
            gc = g_ref[0, pl.ds(r0, chunk_rows), :]
            if magnitude_psnr:
                uc = jnp.abs(uc)
                gc = jnp.abs(gc)
            # Subtract in the input dtype (bf16-native on v6e/v7x); single
            # cast of the diff to f32 before squaring/accumulating.
            d = (uc - gc).astype(jnp.float32)
            sq = d * d
            if valid_rows is not None:
                # Ragged last block: rows beyond `valid_rows` are OOB garbage
                # (possibly NaN/Inf) -> zero them before accumulation.
                row = r0 + lax.broadcasted_iota(
                    jnp.int32, (chunk_rows, _LANES), 0)
                sq = jnp.where(row < valid_rows, sq, 0.0)
            # (chunk_rows, 128) -> (G, 8, 128): layout no-op; summing the
            # leading axis is pure vreg adds (VPU only).
            sq = sq.reshape(groups_per_chunk, _SUBLANES, _LANES)
            return acc + jnp.sum(sq, axis=0)

        unroll = True if n_chunks <= 8 else 8
        acc = lax.fori_loop(0, n_chunks, body,
                            jnp.zeros((_SUBLANES, _LANES), jnp.float32),
                            unroll=unroll)
        sse_ref[0, 0, :, :] += acc

    gk = c * kt_per_core + k      # global reduction-block index
    if valid_rows_last != rows_tile:
        @pl.when(gk != kt - 1)
        def _():
            accumulate(None)

        @pl.when(gk == kt - 1)
        def _():
            accumulate(valid_rows_last)
    else:
        accumulate(None)


def psnr_pallas(u, g, *, max_value=1.0, magnitude_psnr=True):
    """Pallas TPU implementation of PSNR.forward. Returns a float32 scalar."""
    # TODO(synk): max_value='on_fly' (global max of |g|) and complex inputs are
    # not supported in this kernel; only real inputs with a static max_value.
    assert u.shape == g.shape
    batch = u.shape[0]
    n_elems = 1
    for s in u.shape[1:]:
        n_elems *= s
    assert n_elems > 0

    # reshape(B, -1) of a contiguous array is free (no HBM copy).
    u2 = u.reshape(batch, n_elems)
    g2 = g.reshape(batch, n_elems)

    # Lane-dense (B, rows, 128) layout.  When n_elems % 128 == 0 (the common
    # case for image tensors) this is a free reshape -- no padding copy.
    n_128 = _round_up(n_elems, _LANES)
    if n_128 != n_elems:
        # TODO(synk): handle the <128-element ragged tail without jnp.pad
        # (e.g. manual DMA of the unaligned tail); rare for image tensors.
        pad = ((0, 0), (0, n_128 - n_elems))
        u2 = jnp.pad(u2, pad)
        g2 = jnp.pad(g2, pad)
    rows = n_128 // _LANES

    u3 = u2.reshape(batch, rows, _LANES)
    g3 = g2.reshape(batch, rows, _LANES)

    itemsize = u.dtype.itemsize

    # Tiling: chunk_rows (inner fori_loop step) is a multiple of 8 sublanes;
    # rows_tile (block) is a multiple of chunk_rows, ~4 MiB per input block.
    chunk_rows = min(_MAX_CHUNK_ROWS, _round_up(rows, _SUBLANES))
    rows_target = max(
        chunk_rows,
        (_TARGET_BLOCK_BYTES // (_LANES * itemsize)) // chunk_rows * chunk_rows)
    rows_tile = min(rows_target, _round_up(rows, chunk_rows))
    kt = _cdiv(rows, rows_tile)
    valid_rows_last = rows - (kt - 1) * rows_tile   # rows valid in last block

    # v7x: split the reduction axis across the two TensorCores when it divides
    # evenly (harmless on single-TC v5e/v6e; batch axis is also "parallel").
    nc = 2 if (kt >= 2 and kt % 2 == 0) else 1
    kt_per_core = kt // nc

    kernel = functools.partial(
        _psnr_sse_kernel, magnitude_psnr=magnitude_psnr, rows_tile=rows_tile,
        chunk_rows=chunk_rows, kt=kt, kt_per_core=kt_per_core,
        valid_rows_last=valid_rows_last)

    in_block = pl.BlockSpec((1, rows_tile, _LANES),
                            lambda c, b, k: (b, c * kt_per_core + k, 0))
    out_block = pl.BlockSpec((1, 1, _SUBLANES, _LANES),
                             lambda c, b, k: (c, b, 0, 0))

    cost = pl.CostEstimate(
        flops=5 * batch * n_128,
        bytes_accessed=(2 * batch * n_128 * itemsize
                        + nc * batch * _SUBLANES * _LANES * 4),
        transcendentals=0)

    partial_sse = pl.pallas_call(
        kernel,
        out_shape=jax.ShapeDtypeStruct((nc, batch, _SUBLANES, _LANES),
                                       jnp.float32),
        grid_spec=pltpu.PrefetchScalarGridSpec(
            num_scalar_prefetch=0,
            grid=(nc, batch, kt_per_core),
            in_specs=[in_block, in_block],
            out_specs=out_block,
        ),
        compiler_params=pltpu.CompilerParams(
            dimension_semantics=("parallel", "parallel", "arbitrary"),
            vmem_limit_bytes=48 * 1024 * 1024,
        ),
        cost_estimate=cost,
    )(u3, g3)

    # Finalize in plain JAX: one cross-lane sum + B transcendentals.
    sse = jnp.sum(partial_sse, axis=(0, 2, 3))               # (B,)
    mse = sse / jnp.float32(n_elems)                         # true element count
    psnr_b = 20.0 * jnp.log10(jnp.float32(max_value) / jnp.sqrt(mse))
    return jnp.mean(psnr_b)


def psnr_ref(u, g, *, max_value=1.0, magnitude_psnr=True):
    """Pure-JAX reference mirroring the PyTorch module."""
    if magnitude_psnr:
        u, g = jnp.abs(u), jnp.abs(g)
    b = u.shape[0]
    diff = u.reshape(b, -1) - g.reshape(b, -1)
    square = diff * diff
    mse = jnp.mean(square, axis=-1)
    return jnp.mean(20.0 * jnp.log10(max_value / jnp.sqrt(mse)))


if __name__ == "__main__":
    key = jax.random.PRNGKey(0)
    k1, k2 = jax.random.split(key)
    # NCHW inputs, like the PyTorch module would receive.
    x_shape = (2, 4, 16, 16)
    g = jax.random.uniform(k1, x_shape, dtype=jnp.float32)            # ground truth
    u = g + 0.05 * jax.random.normal(k2, x_shape, dtype=jnp.float32)  # noised

    out = psnr_pallas(u, g, max_value=1.0, magnitude_psnr=True)
    out = jax.block_until_ready(out)

    ref = psnr_ref(u, g, max_value=1.0, magnitude_psnr=True)
    assert jnp.allclose(out, ref, rtol=1e-5, atol=1e-5), (out, ref)
    print("KERNEL_OK")
</pallas_src>

<mosaic_0001>
module attributes {stable_mosaic.version = 11 : i64} {
  func.func @_psnr_sse_kernel(%arg0: i32, %arg1: i32, %arg2: i32, %arg3: memref<1x8x128xf32, #tpu.memory_space<vmem>>, %arg4: memref<1x8x128xf32, #tpu.memory_space<vmem>>, %arg5: memref<1x1x8x128xf32, #tpu.memory_space<vmem>>) attributes {dimension_semantics = [#tpu.dimension_semantics<parallel>, #tpu.dimension_semantics<parallel>, #tpu.dimension_semantics<arbitrary>], iteration_bounds = array<i64: 1, 2, 1>, scalar_prefetch = 0 : i64, scratch_operands = 0 : i64, tpu.core_type = #tpu.core_type<tc>, window_params = [{transform_indices = @transform_0, window_bounds = array<i64: 1, 8, 128>}, {transform_indices = @transform_1, window_bounds = array<i64: 1, 8, 128>}, {transform_indices = @transform_2, window_bounds = array<i64: 1, 1, 8, 128>}]} {
    %c0_i32 = arith.constant 0 : i32
    %0 = arith.cmpi eq, %arg2, %c0_i32 : i32
    %1 = arith.extui %0 : i1 to i32
    %c0_i32_0 = arith.constant 0 : i32
    %2 = arith.cmpi ne, %1, %c0_i32_0 : i32
    scf.if %2 {
      %cst_14 = arith.constant 0.000000e+00 : f32
      %25 = vector.broadcast %cst_14 : f32 to vector<1x1x8x128xf32>
      %c0_15 = arith.constant 0 : index
      %c0_16 = arith.constant 0 : index
      %c0_17 = arith.constant 0 : index
      %c0_18 = arith.constant 0 : index
      %26 = vector.load %arg5[%c0_15, %c0_16, %c0_17, %c0_18] : memref<1x1x8x128xf32, #tpu.memory_space<vmem>>, vector<1x1x8x128xf32>
      tpu.vector_store %arg5[%c0_15, %c0_16, %c0_17, %c0_18], %25 {strides = array<i32>} : memref<1x1x8x128xf32, #tpu.memory_space<vmem>>, vector<1x1x8x128xf32>,
    } else {
    }
    %cst = arith.constant 0.000000e+00 : f32
    %3 = vector.broadcast %cst : f32 to vector<8x128xf32>
    %c0_i32_1 = arith.constant 0 : i32
    %c8_i32 = arith.constant 8 : i32
    %4 = arith.muli %c0_i32_1, %c8_i32 : i32
    %5 = tpu.assume_multiple %4, 8 : i32
    %c0 = arith.constant 0 : index
    %6 = arith.index_cast %5 : i32 to index
    %c0_2 = arith.constant 0 : index
    %7 = vector.load %arg3[%c0, %6, %c0_2] : memref<1x8x128xf32, #tpu.memory_space<vmem>>, vector<1x8x128xf32>
    %8 = vector.shape_cast %7 : vector<1x8x128xf32> to vector<8x128xf32>
    %c0_3 = arith.constant 0 : index
    %9 = arith.index_cast %5 : i32 to index
    %c0_4 = arith.constant 0 : index
    %10 = vector.load %arg4[%c0_3, %9, %c0_4] : memref<1x8x128xf32, #tpu.memory_space<vmem>>, vector<1x8x128xf32>
    %11 = vector.shape_cast %10 : vector<1x8x128xf32> to vector<8x128xf32>
    %12 = math.absf %8 : vector<8x128xf32>
    %13 = math.absf %11 : vector<8x128xf32>
    %14 = arith.subf %12, %13 : vector<8x128xf32>
    %15 = arith.mulf %14, %14 : vector<8x128xf32>
    %16 = vector.shape_cast %15 : vector<8x128xf32> to vector<1x8x128xf32>
    %cst_5 = arith.constant dense<0.000000e+00> : vector<8x128xf32>
    %17 = vector.multi_reduction <add>, %16, %cst_5 [0] : vector<1x8x128xf32> to vector<8x128xf32>
    %18 = arith.addf %3, %17 : vector<8x128xf32>
    %c1_i32 = arith.constant 1 : i32
    %c0_6 = arith.constant 0 : index
    %c0_7 = arith.constant 0 : index
    %c0_8 = arith.constant 0 : index
    %c0_9 = arith.constant 0 : index
    %19 = vector.load %arg5[%c0_6, %c0_7, %c0_8, %c0_9] : memref<1x1x8x128xf32, #tpu.memory_space<vmem>>, vector<1x1x8x128xf32>
    %20 = vector.shape_cast %19 : vector<1x1x8x128xf32> to vector<8x128xf32>
    %21 = arith.addf %20, %18 : vector<8x128xf32>
    %c0_10 = arith.constant 0 : index
    %c0_11 = arith.constant 0 : index
    %c0_12 = arith.constant 0 : index
    %c0_13 = arith.constant 0 : index
    %22 = vector.load %arg5[%c0_10, %c0_11, %c0_12, %c0_13] : memref<1x1x8x128xf32, #tpu.memory_space<vmem>>, vector<1x1x8x128xf32>
    %23 = vector.shape_cast %22 : vector<1x1x8x128xf32> to vector<8x128xf32>
    %24 = vector.shape_cast %21 : vector<8x128xf32> to vector<1x1x8x128xf32>
    tpu.vector_store %arg5[%c0_10, %c0_11, %c0_12, %c0_13], %24 {strides = array<i32>} : memref<1x1x8x128xf32, #tpu.memory_space<vmem>>, vector<1x1x8x128xf32>,
    return
  }
  func.func @transform_0(%arg0: i32, %arg1: i32, %arg2: i32) -> (i32, i32, i32) {
    %c1_i32 = arith.constant 1 : i32
    %0 = arith.muli %arg0, %c1_i32 : i32
    %1 = arith.addi %0, %arg2 : i32
    %c0_i32 = arith.constant 0 : i32
    %c0_i32_0 = arith.constant 0 : i32
    return %arg1, %1, %c0_i32 : i32, i32, i32
  }
  func.func @transform_1(%arg0: i32, %arg1: i32, %arg2: i32) -> (i32, i32, i32) {
    %c1_i32 = arith.constant 1 : i32
    %0 = arith.muli %arg0, %c1_i32 : i32
    %1 = arith.addi %0, %arg2 : i32
    %c0_i32 = arith.constant 0 : i32
    %c0_i32_0 = arith.constant 0 : i32
    return %arg1, %1, %c0_i32 : i32, i32, i32
  }
  func.func @transform_2(%arg0: i32, %arg1: i32, %arg2: i32) -> (i32, i32, i32, i32) {
    %c0_i32 = arith.constant 0 : i32
    %c0_i32_0 = arith.constant 0 : i32
    %c0_i32_1 = arith.constant 0 : i32
    return %arg0, %arg1, %c0_i32, %c0_i32_0 : i32, i32, i32, i32
  }
}

</mosaic_0001>

<bundles_post_ra>
// kernel: tpu_custom_call.1
= control target key start
LH: loop header
LB: loop body
LE: loop exit
PB: predicated region body
PF: predicated region fallthrough
CT: control target
= control target key end

     0   :  { %7 = vsyncpa [#allocation3], 0  ;;  %s843_s0 = inlined_call_operand.hbm [shape: f32[2,8,128], index: 0, kind: input, shape index: {}]   ;;  %s844_s1 = inlined_call_operand.hbm [shape: f32[2,8,128], index: 1, kind: input, shape index: {}]   ;;  %s845_s2 = inlined_call_operand.hbm [shape: f32[1,2,8,128], index: 2, kind: output, shape index: {}]  }
   0x1   :  { %9 = vsyncpa [#allocation3 + $0x1], 0 }
   0x2   :  { %10 = vsyncpa [#allocation6], 0 }
   0x3   :  { %12 = vsyncpa [#allocation6 + $0x1], 0 }
   0x4   :  { %13 = vsyncpa [#allocation4], 0 }
   0x5   :  { %15 = vsyncpa [#allocation4 + $0x1], 0  ;;  %s623_s9 = smov 0   ;;  %s625_s10 = smov 0  }
   0x6   :  { %s627_s11 = smov 0   ;;  %s629_s12 = smov 0  }
   0x7   :  { %s631_s13 = smov 0   ;;  %s633_s14 = smov 0  }
   0x8 LB: > { %s373_s15 = sadd.s32 4294967295, %s603_s14   ;;  %s374_s16 = sadd.s32 4294967294, %s603_s14   ;;  %s603_s14 = sphi %s633_s14, %s21_s14   ;;  %s599_s13 = sphi %s631_s13, %s865_s13   ;;  %s595_s12 = sphi %s629_s12, %s864_s12   ;;  %s591_s11 = sphi %s627_s11, %s863_s11   ;;  %s587_s10 = sphi %s625_s10, %s862_s10   ;;  %s583_s9 = sphi %s623_s9, %s861_s9  }
   0x9   : > { %s36_s17 = sadd.s32 1, %s599_s13  ;;  %s51_s18 = sadd.s32 1, %s591_s11 }
   0xa   : > { %p38_p0 = scmp.ge.s32.totalorder %s36_s17, 2  ;;  %p58_p1 = scmp.ne.s32.totalorder %s591_s11, %s587_s10 }
   0xb   : > { %p59_p2 = scmp.eq.s32.totalorder %s603_s14, 0  ;;  %p64_p3 = scmp.ne.s32.totalorder %s587_s10, %s583_s9 }
   0xc   : > { %s867_s17 = smov (%p38_p0, %s36_s17), 0  ;;  %p65_p5 = scmp.eq.s32.totalorder %s373_s15, 0 }
   0xd   : > { %p664_p4 = por %p59_p2, %p58_p1  ;;  %s46_s20 = ssub.s32 %s599_s13, %s867_s17 }
   0xe   : > { %p120_p6 = scmp.eq.s32.totalorder %s373_s15, 1  ;;  %p49_p7 = scmp.eq.s32.totalorder %s46_s20, 0 }
   0xf   : > { %p670_p8 = por %p65_p5, %p64_p3  ;;  %p126_p10 = scmp.eq.s32.totalorder %s374_s16, 1 }
  0x10   : > { %p674_p9 = por %p120_p6, %p58_p1  ;;  %p406_p13 = scmp.lt.s32.totalorder %s603_s14, 2 }
  0x11   : > { %s849_s21 = scalar_select %p670_p8, 1, 0 }
  0x12   : > { %s850_s22 = scalar_select %p674_p9, 1, 0 }
  0x13   : > { %s679_s23 = scalar_select %p49_p7, %s591_s11, %s51_s18  }
  0x14   : > { %p681_p11 = por %p126_p10, %p64_p3  ;;  %s688_s25 = sand.u32 1, %s591_s11  }
  0x15   : > { %s377_s26 = sshll.u32 %s688_s25, 3  ;;  %s378_s27 = sshll.u32 %s599_s13, 7 }
  0x16   : > { %s851_s24 = scalar_select %p681_p11, 1, 0 }
  0x17   : > { %s697_s30 = scalar_lea.hbm %s843_s0, %s378_s27  ;;  %s150_s3 = scalar_lea.vmem [#allocation2], %s377_s26 }
  0x18   : > { %s159_s4 = sshll.u32 %s150_s3, 4  ;;  %p705_p0 = pnand %p406_p13, %p664_p4  ;;  %s701_s4 = int_to_ptr.vmem [resolvable:$true] %s159_s4 }
  0x19   : > { %s147_s6 = scalar_lea.sflag [#allocation3], %s688_s25  ;;  %s457_s7 = scalar_lea.hbm %s697_s30, 128 }
  0x1a   : > { %p458_p3 = scmp.ne.s32.totalorder %s697_s30, %s457_s7  ;;  %p459_p5 = pneg %p705_p0 }
  0x1b   : > { %s462_s16 = scalar_lea.hbm %s843_s0, 256  ;;  %p463_p4 = scmp.lt.u32.totalorder %s697_s30, %s843_s0 }
  0x1c   : > { %p460_p6 = pnand %p459_p5, %p458_p3  ;;  %p464_p10 = scmp.lt.u32.totalorder %s462_s16, %s457_s7 }
  0x1d   : > { %p466_p12 = scmp.lt.u32.totalorder %s457_s7, %s697_s30 }
  0x1e   : > { %p461_p7 = pneg %p460_p6  ;;  %p465_p13 = por %p464_p10, %p463_p4 }
  0x20   : > { %p467_p1 = por %p466_p12, %p465_p13 }
  0x22   : > { %p468_p2 = pnand %p467_p1, %p461_p7 }
  0x24   : > { %471 = shalt.err (!%p468_p2)
}
  0x25   : > { %s472_s20 = scalar_lea.vmem %s701_s4, 128  ;;  %s605_s28 = smov [#allocation2]  }
  0x26   : > { %p473_p3 = scmp.ne.s32.totalorder %s701_s4, %s472_s20  ;;  %s477_s29 = sshll.u32 %s605_s28, 4  ;;  %s478_s29 = int_to_ptr.vmem [resolvable:$false] %s477_s29 }
  0x27   : > { %s479_s3 = scalar_lea.vmem %s478_s29, 256  ;;  %p480_p9 = scmp.lt.s32.totalorder %s701_s4, %s478_s29 }
  0x28   : > { %p475_p6 = pnand %p473_p3, %p459_p5  ;;  %p481_p4 = scmp.lt.s32.totalorder %s479_s3, %s472_s20 }
  0x2a   : > { %p476_p11 = pneg %p475_p6  ;;  %p482_p10 = por %p481_p4, %p480_p9 }
  0x2c   : > { %p483_p12 = pnand %p482_p10, %p476_p11 }
  0x2e   : > { %486 = shalt.err (!%p483_p12)
}
  0x2f   : > { %398 = dma.hbm_to_vmem [thread:$0]  (!%p705_p0), %s697_s30, 128, %s701_s4, %s147_s6  }
  0x30   : > { %p853_p1 = scmp.lt.s32.totalorder %s603_s14, 3  ;;  %p854_p2 = scmp.ge.s32.totalorder %s603_s14, 1 }
  0x31   : > { %s750_s16 = scalar_lea.hbm %s844_s1, %s378_s27  ;;  %s170_s18 = scalar_lea.vmem [#allocation5], %s377_s26 }
  0x32   : > { %p741_p7 = pnand %p854_p2, %p853_p1  ;;  %s179_s19 = sshll.u32 %s170_s18, 4  ;;  %s180_s19 = int_to_ptr.vmem [resolvable:$true] %s179_s19 }
  0x33   : > { %s167_s30 = scalar_lea.sflag [#allocation6], %s688_s25  ;;  %s487_s4 = scalar_lea.hbm %s750_s16, 128 }
  0x34   : > { %s855_s7 = scalar_select %p741_p7, 1, 0 }
  0x35   : > { %p488_p9 = scmp.ne.s32.totalorder %s750_s16, %s487_s4  ;;  %s492_s27 = scalar_lea.hbm %s844_s1, 256 }
  0x36   : > { %p493_p3 = scmp.lt.u32.totalorder %s750_s16, %s844_s1  ;;  %p494_p6 = scmp.lt.u32.totalorder %s492_s27, %s487_s4 }
  0x37   : > { %p490_p11 = pnand %p488_p9, %p459_p5  ;;  %p496_p10 = scmp.lt.u32.totalorder %s487_s4, %s750_s16 }
  0x38   : > { %p495_p4 = por %p494_p6, %p493_p3 }
  0x39   : > { %p491_p13 = pneg %p490_p11 }
  0x3a   : > { %p497_p12 = por %p496_p10, %p495_p4 }
  0x3c   : > { %p498_p1 = pnand %p497_p12, %p491_p13 }
  0x3e   : > { %501 = shalt.err (!%p498_p1)
}
  0x3f   : > { %s502_s25 = scalar_lea.vmem %s180_s19, 128  ;;  %s606_s26 = smov [#allocation5]  }
  0x40   : > { %p503_p2 = scmp.ne.s32.totalorder %s180_s19, %s502_s25  ;;  %s507_s3 = sshll.u32 %s606_s26, 4  ;;  %s508_s3 = int_to_ptr.vmem [resolvable:$false] %s507_s3 }
  0x41   : > { %s509_s8 = scalar_lea.vmem %s508_s3, 256  ;;  %p510_p8 = scmp.lt.s32.totalorder %s180_s19, %s508_s3 }
  0x42   : > { %p505_p9 = pnand %p503_p2, %p459_p5  ;;  %p511_p7 = scmp.lt.s32.totalorder %s509_s8, %s502_s25 }
  0x44   : > { %p506_p11 = pneg %p505_p9  ;;  %p512_p3 = por %p511_p7, %p510_p8 }
  0x46   : > { %p513_p6 = pnand %p512_p3, %p506_p11 }
  0x48   : > { %516 = shalt.err (!%p513_p6)
}
  0x49   : > { %401 = dma.hbm_to_vmem [thread:$0]  (!%p705_p0), %s750_s16, 128, %s180_s19, %s167_s30  }
  0x4a   : > { %p856_p13 = scmp.ne.s32.totalorder %s855_s7, 0 }
  0x4b   : > { %s777_s15 = sand.u32 (!%p856_p13), 1, %s587_s10   ;;  %p857_p5 = scmp.ne.s32.totalorder (!%p856_p13), %s849_s21, 0 }
  0x4c   : > { %188 = sbr.rel (%p856_p13) target bundleno = 112 (0x70), region = 28  ;;  %s382_s18 = sshll.u32 (!%p856_p13), %s777_s15, 3 }
  0x4d   : > { %s191_s4 = scalar_lea.sflag (!%p856_p13), [#allocation3], %s777_s15  ;;  %s194_s6 = scalar_lea.vmem (!%p856_p13), [#allocation2], %s382_s18 }
  0x53   : > { %570 = dma.done.wait (%p857_p5), %s191_s4, 128  }
  0x54   : > { %572 = vsyncadd (%p857_p5), %s191_s4, 4294967168  ;;  %s200_s5 = scalar_lea.sflag [#allocation6], %s777_s15  ;;  %s203_s16 = scalar_lea.vmem [#allocation5], %s382_s18 }
  0x55   : > { %574 = dma.done.wait (%p857_p5), %s200_s5, 128  }
  0x56   : > { %576 = vsyncadd (%p857_p5), %s200_s5, 4294967168  ;;  %v236_v0 = vld [vmem:[%s194_s6] sm:$0xff]  ;;  %v237_v1 = vld [vmem:[%s203_s16] sm:$0xff]  ;;  %s386_s7 = sshll.u32 %s595_s12, 7  ;;  %s228_s19 = scalar_lea.vmem [#allocation7], %s382_s18 }
  0x57   : > { %v238_v2 = vand.u32 2147483647, %v236_v0  ;;  %v239_v3 = vand.u32 2147483647, %v237_v1  ;;  %s263_s30 = sshll.u32 %s228_s19, 4  ;;  %s794_s28 = scalar_lea.hbm %s845_s2, %s386_s7  ;;  %s796_s30 = int_to_ptr.vmem [resolvable:$true] %s263_s30 }
  0x58   : > { %s248_s21 = scalar_lea.sflag [#allocation4], %s777_s15  ;;  %s517_s29 = scalar_lea.vmem %s796_s30, 128 }
  0x59   : > { %v240_v4 = vsub.f32 %v238_v2, %v239_v3  ;;  %p518_p8 = scmp.ne.s32.totalorder %s796_s30, %s517_s29  ;;  %p858_p0 = scmp.ne.s32.totalorder %s850_s22, 0 }
  0x5a   : > { %s607_s12 = smov [#allocation7]  }
  0x5b   : > { %v241_v5 = vmul.f32 %v240_v4, %v240_v4  ;;  %p519_p7 = pnand %p518_p8, %p858_p0  ;;  %s521_s25 = sshll.u32 %s607_s12, 4  ;;  %s522_s25 = int_to_ptr.vmem [resolvable:$false] %s521_s25 }
  0x5c   : > { %s523_s26 = scalar_lea.vmem %s522_s25, 256  ;;  %p524_p10 = scmp.lt.s32.totalorder %s796_s30, %s522_s25 }
  0x5d   : > { %246 = vst [vmem:[%s228_s19] sm:$0xff] %v241_v5  ;;  %p520_p4 = pneg %p519_p7  ;;  %p525_p12 = scmp.lt.s32.totalorder %s523_s26, %s517_s29 }
  0x5f   : > { %p526_p1 = por %p525_p12, %p524_p10 }
  0x61   : > { %p527_p2 = pnand %p526_p1, %p520_p4 }
  0x63   : > { %530 = shalt.err (!%p527_p2)
}
  0x64   : > { %s531_s3 = scalar_lea.hbm %s794_s28, 128  ;;  %s535_s18 = scalar_lea.hbm %s845_s2, 256 }
  0x65   : > { %p532_p9 = scmp.ne.s32.totalorder %s794_s28, %s531_s3  ;;  %p536_p6 = scmp.lt.u32.totalorder %s794_s28, %s845_s2 }
  0x66   : > { %p537_p13 = scmp.lt.u32.totalorder %s535_s18, %s531_s3  ;;  %p539_p8 = scmp.lt.u32.totalorder %s531_s3, %s794_s28 }
  0x67   : > { %p533_p11 = pnand %p532_p9, %p858_p0 }
  0x68   : > { %p538_p5 = por %p537_p13, %p536_p6 }
  0x69   : > { %p534_p3 = pneg %p533_p11 }
  0x6a   : > { %p540_p7 = por %p539_p8, %p538_p5 }
  0x6c   : > { %p541_p4 = pnand %p540_p7, %p534_p3 }
  0x6e   : > { %544 = shalt.err (!%p541_p4)
}
  0x6f   : > { %393 = dma.vmem_to_hbm [thread:$0]  (%p858_p0), %s796_s30, 128, %s794_s28, %s248_s21  }
  0x70 PF: > { %s275_s5 = sand.u32 1, %s583_s9   ;;  %p859_p10 = scmp.ne.s32.totalorder %s851_s24, 0 }
  0x71   : > { %p860_p12 = scmp.ge.s32.totalorder %s603_s14, 2  ;;  %s276_s16 = scalar_lea.sflag [#allocation4], %s275_s5 }
  0x73   : > { %p403_p1 = pnand %p860_p12, %p859_p10 }
  0x75   : > { %578 = dma.done.wait (!%p403_p1), %s276_s16, 128  }
  0x76   : > { %580 = vsyncadd (!%p403_p1), %s276_s16, 4294967168  ;;  %s21_s14 = sadd.s32 1, %s603_s14   ;;  %s861_s9 = smov %s587_s10 }
  0x77   : > { %p18_p2 = scmp.ge.s32.totalorder %s21_s14, 4   ;;  %s862_s10 = smov %s591_s11 }
  0x78   : > { %s863_s11 = smov %s679_s23  ;;  %s864_s12 = smov %s599_s13 }
  0x79   : > { %s865_s13 = smov %s867_s17  ;;  %20 = sbr.rel (!%p18_p2) target bundleno = 8 (0x8), region = 90 }
  0x80   :  { %281 = vsyncpa [#allocation3], 1 }
  0x81   :  { %283 = vsyncpa [#allocation3 + $0x1], 1 }
  0x82   :  { %284 = vsyncpa [#allocation6], 1 }
  0x83   :  { %286 = vsyncpa [#allocation6 + $0x1], 1 }
  0x84   :  { %287 = vsyncpa [#allocation4], 1 }
  0x85   :  { %289 = vsyncpa [#allocation4 + $0x1], 1 }

</bundles_post_ra>
